<compile_context>
chip_gen: v6e
topology: v6e:2x2x1
jax: 0.10.0
libtpu: 0.0.40
codegen_flags: <defaults>
</compile_context>

<pallas_src>
import functools

import jax
import jax.numpy as jnp
from jax.experimental import pallas as pl
from jax.experimental.pallas import tpu as pltpu


def _round_up(x, m):
    return (x + m - 1) // m * m


def grader_kernel(x_ref, gd_ref, w1_ref, b1_ref, w2_ref, b2_ref, w3d_ref, out_ref):
    wdt = w1_ref.dtype                                    # f32 or bf16 (static)
    # grader_in_fc + ReLU
    h = jnp.dot(x_ref[...].astype(wdt), w1_ref[...],
                preferred_element_type=jnp.float32) + b1_ref[...]
    h = jnp.maximum(h, 0.0)
    # grader_fc + ReLU
    h = jnp.dot(h.astype(wdt), w2_ref[...],
                preferred_element_type=jnp.float32) + b2_ref[...]
    h = jnp.maximum(h, 0.0)
    # Collapsed 2-logit head: VPU multiply + XLU lane-reduction (avoids an
    # N=1 MXU matmul and the 128-lane broadcast writeback).
    s = jnp.sum(h * w3d_ref[...], axis=-1, keepdims=True)            # (tb, 1)
    s = s + gd_ref[...]                  # gd already carries b3[1]-b3[0]
    # grade = -(argmax == 1); strict ">" keeps tie -> index 0 -> grade 0.
    out_ref[...] = jnp.where(s > 0.0, jnp.float32(-1.0), jnp.float32(0.0))


@functools.partial(jax.jit, static_argnames=("tile_b", "use_bf16"))
def grader_forward(traj, gumbel_noise, params, *, tile_b=2048, use_bf16=False):
    """traj: (B, input_dim) f32, gumbel_noise: (B, 2) f32. Returns (B,) grades."""
    w1, b1, w2, b2, w3, b3 = params
    B, D = traj.shape
    H = w1.shape[1]

    wdt = jnp.bfloat16 if use_bf16 else jnp.float32
    w1c = w1.astype(wdt)
    w2c = w2.astype(wdt)
    b1r = b1.reshape(1, H).astype(jnp.float32)
    b2r = b2.reshape(1, H).astype(jnp.float32)

    # Collapse head + hard gumbel-softmax + [[0],[1]] projection + negation.
    w3d = (w3[:, 1] - w3[:, 0]).reshape(1, H).astype(jnp.float32)     # (1, H)
    b3f = b3.reshape(-1)
    gd = (gumbel_noise[:, 1] - gumbel_noise[:, 0] + (b3f[1] - b3f[0]))[:, None]

    # Batch tiling: tile must be a multiple of 8 sublanes; partial last block
    # is handled by Pallas (grid = cdiv).
    tb = min(_round_up(max(int(tile_b), 8), 8), _round_up(B, 8))
    grid = (pl.cdiv(B, tb),)
    const = lambda i: (0, 0)

    out = pl.pallas_call(
        grader_kernel,
        out_shape=jax.ShapeDtypeStruct((B, 1), jnp.float32),
        grid=grid,
        in_specs=[
            pl.BlockSpec((tb, D), lambda i: (i, 0)),   # traj tile (unpadded HBM)
            pl.BlockSpec((tb, 1), lambda i: (i, 0)),   # gumbel diff (+ b3 diff)
            pl.BlockSpec((D, H), const),               # w1   (VMEM-resident)
            pl.BlockSpec((1, H), const),               # b1
            pl.BlockSpec((H, H), const),               # w2
            pl.BlockSpec((1, H), const),               # b2
            pl.BlockSpec((1, H), const),               # w3 difference row
        ],
        out_specs=pl.BlockSpec((tb, 1), lambda i: (i, 0)),  # narrow f32 column
        compiler_params=pltpu.CompilerParams(
            dimension_semantics=("parallel",)),        # v7x: shard batch across TCs
    )(traj, gd, w1c, b1r, w2c, b2r, w3d)

    return out[:, 0]


def init_params(key, input_dim, hidden_dim):
    """Deterministic init matching nn.Linear's U(-1/sqrt(fan_in), 1/sqrt(fan_in)).
    Weights stored transposed as (in_features, out_features)."""
    def linear(k, fan_in, fan_out):
        kw, kb = jax.random.split(k)
        bound = 1.0 / jnp.sqrt(fan_in)
        w = jax.random.uniform(kw, (fan_in, fan_out), jnp.float32, -bound, bound)
        b = jax.random.uniform(kb, (1, fan_out), jnp.float32, -bound, bound)
        return w, b

    k1, k2, k3 = jax.random.split(key, 3)
    w1, b1 = linear(k1, input_dim, hidden_dim)
    w2, b2 = linear(k2, hidden_dim, hidden_dim)
    w3, b3 = linear(k3, hidden_dim, 2)
    return (w1, b1, w2, b2, w3, b3)


def _reference(traj, gumbel_noise, params):
    w1, b1, w2, b2, w3, b3 = params
    h = jnp.maximum(traj @ w1 + b1, 0.0)
    h = jnp.maximum(h @ w2 + b2, 0.0)
    logits = h @ w3 + b3
    pert = logits + gumbel_noise
    return -(jnp.argmax(pert, axis=-1).astype(jnp.float32))


if __name__ == "__main__":
    key = jax.random.PRNGKey(0)

    # --- small shapes consistent with the module -----------------------------
    B, INPUT_DIM, HIDDEN_DIM = 8, 32, 32
    k_traj, k_params, k_gumbel, k2_traj, k2_gumbel = jax.random.split(key, 5)

    traj = jax.random.normal(k_traj, (B, INPUT_DIM), jnp.float32)
    params = init_params(k_params, INPUT_DIM, HIDDEN_DIM)
    gumbel_noise = jax.random.gumbel(k_gumbel, (B, 2), jnp.float32)

    grade = grader_forward(traj, gumbel_noise, params)
    jax.block_until_ready(grade)
    ref = _reference(traj, gumbel_noise, params)
    assert grade.shape == (B,)
    assert jnp.allclose(grade, ref, atol=1e-5), (grade, ref)

    # --- non-multiple batch, multi-step grid with partial last block ---------
    B2 = 333
    traj2 = jax.random.normal(k2_traj, (B2, INPUT_DIM), jnp.float32)
    gumbel2 = jax.random.gumbel(k2_gumbel, (B2, 2), jnp.float32)
    grade2 = grader_forward(traj2, gumbel2, params, tile_b=128)
    jax.block_until_ready(grade2)
    ref2 = _reference(traj2, gumbel2, params)
    assert grade2.shape == (B2,)
    assert jnp.allclose(grade2, ref2, atol=1e-5)

    # --- default (large) tile: single partial block covering all of B2 -------
    grade3 = grader_forward(traj2, gumbel2, params)
    jax.block_until_ready(grade3)
    assert jnp.allclose(grade3, ref2, atol=1e-5)

    # --- bf16 matmul path (v5e optimization): compile/run + range check only,
    #     hard decisions near zero may legitimately flip vs the f32 reference.
    grade4 = grader_forward(traj2, gumbel2, params, tile_b=128, use_bf16=True)
    jax.block_until_ready(grade4)
    assert grade4.shape == (B2,)
    assert bool(jnp.all((grade4 == 0.0) | (grade4 == -1.0)))

    print("KERNEL_OK")
</pallas_src>

<mosaic_0001>
module attributes {stable_mosaic.version = 11 : i64} {
  func.func @grader_kernel(%arg0: i32, %arg1: memref<8x32xf32, #tpu.memory_space<vmem>>, %arg2: memref<8x1xf32, #tpu.memory_space<vmem>>, %arg3: memref<32x32xf32, #tpu.memory_space<vmem>>, %arg4: memref<1x32xf32, #tpu.memory_space<vmem>>, %arg5: memref<32x32xf32, #tpu.memory_space<vmem>>, %arg6: memref<1x32xf32, #tpu.memory_space<vmem>>, %arg7: memref<1x32xf32, #tpu.memory_space<vmem>>, %arg8: memref<8x1xf32, #tpu.memory_space<vmem>>) attributes {dimension_semantics = [#tpu.dimension_semantics<parallel>], iteration_bounds = array<i64: 1>, scalar_prefetch = 0 : i64, scratch_operands = 0 : i64, tpu.core_type = #tpu.core_type<tc>, window_params = [{transform_indices = @transform_0, window_bounds = array<i64: 8, 32>}, {transform_indices = @transform_1, window_bounds = array<i64: 8, 1>}, {pipeline_mode = #tpu.pipeline_mode<synchronous>, transform_indices = @transform_2, window_bounds = array<i64: 32, 32>}, {pipeline_mode = #tpu.pipeline_mode<synchronous>, transform_indices = @transform_3, window_bounds = array<i64: 1, 32>}, {pipeline_mode = #tpu.pipeline_mode<synchronous>, transform_indices = @transform_4, window_bounds = array<i64: 32, 32>}, {pipeline_mode = #tpu.pipeline_mode<synchronous>, transform_indices = @transform_5, window_bounds = array<i64: 1, 32>}, {pipeline_mode = #tpu.pipeline_mode<synchronous>, transform_indices = @transform_6, window_bounds = array<i64: 1, 32>}, {transform_indices = @transform_7, window_bounds = array<i64: 8, 1>}]} {
    %c0 = arith.constant 0 : index
    %c0_0 = arith.constant 0 : index
    %0 = vector.load %arg1[%c0, %c0_0] : memref<8x32xf32, #tpu.memory_space<vmem>>, vector<8x32xf32>
    %c0_1 = arith.constant 0 : index
    %c0_2 = arith.constant 0 : index
    %1 = vector.load %arg3[%c0_1, %c0_2] : memref<32x32xf32, #tpu.memory_space<vmem>>, vector<32x32xf32>
    %cst = arith.constant dense<0.000000e+00> : vector<8x32xf32>
    %2 = tpu.matmul %0, %1, %cst {dimension_numbers = #tpu.dot_dimension_numbers<[1], [0], [0], [1], [0, 0, 1, 1], [], []>} : vector<8x32xf32>, vector<32x32xf32>, vector<8x32xf32> -> vector<8x32xf32>
    %c0_3 = arith.constant 0 : index
    %c0_4 = arith.constant 0 : index
    %3 = vector.load %arg4[%c0_3, %c0_4] : memref<1x32xf32, #tpu.memory_space<vmem>>, vector<1x32xf32>
    %4 = vector.broadcast %3 : vector<1x32xf32> to vector<8x32xf32>
    %5 = arith.addf %2, %4 : vector<8x32xf32>
    %cst_5 = arith.constant 0.000000e+00 : f32
    %6 = vector.broadcast %cst_5 : f32 to vector<8x32xf32>
    %7 = arith.maximumf %5, %6 : vector<8x32xf32>
    %c0_6 = arith.constant 0 : index
    %c0_7 = arith.constant 0 : index
    %8 = vector.load %arg5[%c0_6, %c0_7] : memref<32x32xf32, #tpu.memory_space<vmem>>, vector<32x32xf32>
    %cst_8 = arith.constant dense<0.000000e+00> : vector<8x32xf32>
    %9 = tpu.matmul %7, %8, %cst_8 {dimension_numbers = #tpu.dot_dimension_numbers<[1], [0], [0], [1], [0, 0, 1, 1], [], []>} : vector<8x32xf32>, vector<32x32xf32>, vector<8x32xf32> -> vector<8x32xf32>
    %c0_9 = arith.constant 0 : index
    %c0_10 = arith.constant 0 : index
    %10 = vector.load %arg6[%c0_9, %c0_10] : memref<1x32xf32, #tpu.memory_space<vmem>>, vector<1x32xf32>
    %11 = vector.broadcast %10 : vector<1x32xf32> to vector<8x32xf32>
    %12 = arith.addf %9, %11 : vector<8x32xf32>
    %cst_11 = arith.constant 0.000000e+00 : f32
    %13 = vector.broadcast %cst_11 : f32 to vector<8x32xf32>
    %14 = arith.maximumf %12, %13 : vector<8x32xf32>
    %c0_12 = arith.constant 0 : index
    %c0_13 = arith.constant 0 : index
    %15 = vector.load %arg7[%c0_12, %c0_13] : memref<1x32xf32, #tpu.memory_space<vmem>>, vector<1x32xf32>
    %16 = vector.broadcast %15 : vector<1x32xf32> to vector<8x32xf32>
    %17 = arith.mulf %14, %16 : vector<8x32xf32>
    %cst_14 = arith.constant dense<0.000000e+00> : vector<8xf32>
    %18 = vector.multi_reduction <add>, %17, %cst_14 [1] : vector<8x32xf32> to vector<8xf32>
    %19 = vector.shape_cast %18 : vector<8xf32> to vector<8x1xf32>
    %c0_15 = arith.constant 0 : index
    %c0_16 = arith.constant 0 : index
    %20 = vector.load %arg2[%c0_15, %c0_16] : memref<8x1xf32, #tpu.memory_space<vmem>>, vector<8x1xf32>
    %21 = arith.addf %19, %20 : vector<8x1xf32>
    %cst_17 = arith.constant 0.000000e+00 : f32
    %22 = vector.broadcast %cst_17 : f32 to vector<8x1xf32>
    %23 = arith.cmpf ogt, %21, %22 : vector<8x1xf32>
    %cst_18 = arith.constant -1.000000e+00 : f32
    %cst_19 = arith.constant 0.000000e+00 : f32
    %24 = vector.broadcast %cst_18 : f32 to vector<8x1xf32>
    %25 = vector.broadcast %cst_19 : f32 to vector<8x1xf32>
    %26 = arith.select %23, %24, %25 : vector<8x1xi1>, vector<8x1xf32>
    %c0_20 = arith.constant 0 : index
    %c0_21 = arith.constant 0 : index
    %27 = vector.load %arg8[%c0_20, %c0_21] : memref<8x1xf32, #tpu.memory_space<vmem>>, vector<8x1xf32>
    tpu.vector_store %arg8[%c0_20, %c0_21], %26 {strides = array<i32>} : memref<8x1xf32, #tpu.memory_space<vmem>>, vector<8x1xf32>,
    return
  }
  func.func @transform_0(%arg0: i32) -> (i32, i32) {
    %c0_i32 = arith.constant 0 : i32
    %c0_i32_0 = arith.constant 0 : i32
    return %arg0, %c0_i32 : i32, i32
  }
  func.func @transform_1(%arg0: i32) -> (i32, i32) {
    %c0_i32 = arith.constant 0 : i32
    %c0_i32_0 = arith.constant 0 : i32
    return %arg0, %c0_i32 : i32, i32
  }
  func.func @transform_2(%arg0: i32) -> (i32, i32) {
    %c0_i32 = arith.constant 0 : i32
    %c0_i32_0 = arith.constant 0 : i32
    %c0_i32_1 = arith.constant 0 : i32
    return %c0_i32, %c0_i32_0 : i32, i32
  }
  func.func @transform_3(%arg0: i32) -> (i32, i32) {
    %c0_i32 = arith.constant 0 : i32
    %c0_i32_0 = arith.constant 0 : i32
    %c0_i32_1 = arith.constant 0 : i32
    return %c0_i32, %c0_i32_0 : i32, i32
  }
  func.func @transform_4(%arg0: i32) -> (i32, i32) {
    %c0_i32 = arith.constant 0 : i32
    %c0_i32_0 = arith.constant 0 : i32
    %c0_i32_1 = arith.constant 0 : i32
    return %c0_i32, %c0_i32_0 : i32, i32
  }
  func.func @transform_5(%arg0: i32) -> (i32, i32) {
    %c0_i32 = arith.constant 0 : i32
    %c0_i32_0 = arith.constant 0 : i32
    %c0_i32_1 = arith.constant 0 : i32
    return %c0_i32, %c0_i32_0 : i32, i32
  }
  func.func @transform_6(%arg0: i32) -> (i32, i32) {
    %c0_i32 = arith.constant 0 : i32
    %c0_i32_0 = arith.constant 0 : i32
    %c0_i32_1 = arith.constant 0 : i32
    return %c0_i32, %c0_i32_0 : i32, i32
  }
  func.func @transform_7(%arg0: i32) -> (i32, i32) {
    %c0_i32 = arith.constant 0 : i32
    %c0_i32_0 = arith.constant 0 : i32
    return %arg0, %c0_i32 : i32, i32
  }
}

</mosaic_0001>

<bundles_post_ra>
// kernel: grader_forward.1
= control target key start
LH: loop header
LB: loop body
LE: loop exit
PB: predicated region body
PF: predicated region fallthrough
CT: control target
= control target key end

     0   :  { %12 = vsyncpa [#allocation3], 0  ;;  %s419_s0 = inlined_call_operand.hbm [shape: f32[8,32], index: 0, kind: input, shape index: {}]   ;;  %s420_s1 = inlined_call_operand.vmem [shape: f32[8,1], index: 1, kind: input, shape index: {}]   ;;  %s421_s2 = inlined_call_operand.vmem [shape: f32[32,32], index: 2, kind: input, shape index: {}]   ;;  %s422_s3 = inlined_call_operand.vmem [shape: f32[1,32], index: 3, kind: input, shape index: {}]   ;;  %s423_s4 = inlined_call_operand.vmem [shape: f32[32,32], index: 4, kind: input, shape index: {}]   ;;  %s424_s5 = inlined_call_operand.hbm [shape: f32[1,32], index: 5, kind: input, shape index: {}]   ;;  %s425_s6 = inlined_call_operand.vmem [shape: f32[1,32], index: 6, kind: input, shape index: {}]   ;;  %s426_s7 = inlined_call_operand.vmem [shape: f32[8,1], index: 7, kind: output, shape index: {}]  }
   0x1   :  { %13 = vsyncpa [#allocation5], 0  ;;  %s330_s24 = smov [#allocation2]   ;;  %s331_s26 = smov [#allocation4]  }
   0x2   :  { %s20_s25 = sshll.u32 %s330_s24, 4  ;;  %s38_s27 = sshll.u32 %s331_s26, 4  ;;  %s21_s25 = int_to_ptr.vmem [resolvable:$true] %s20_s25  ;;  %s39_s27 = int_to_ptr.vmem [resolvable:$true] %s38_s27 }
   0x3   :  { %s294_s28 = scalar_lea.vmem %s21_s25, 128  ;;  %p299_p1 = scmp.lt.s32.totalorder %s21_s25, %s21_s25 }
   0x4   :  { %p295_p0 = scmp.ne.s32.totalorder %s21_s25, %s294_s28  ;;  %p300_p2 = scmp.lt.s32.totalorder %s294_s28, %s294_s28 }
   0x6   :  { %p301_p3 = por %p300_p2, %p299_p1 }
   0x8   :  { %p302_p4 = pnand %p301_p3, %p295_p0 }
   0xa   :  { %305 = shalt.err (!%p302_p4)
}
   0xb   :  { %23 = dma.hbm_to_vmem [thread:$0]  %s419_s0, 128, %s21_s25, [#allocation3]  }
   0xc   :  { %s314_s8 = scalar_lea.vmem %s39_s27, 16  ;;  %s318_s9 = scalar_lea.vmem %s39_s27, 32 }
   0xd   :  { %p315_p5 = scmp.ne.s32.totalorder %s39_s27, %s314_s8  ;;  %p319_p6 = scmp.lt.s32.totalorder %s39_s27, %s39_s27 }
   0xe   :  { %p320_p7 = scmp.lt.s32.totalorder %s318_s9, %s314_s8 }
  0x10   :  { %p321_p8 = por %p320_p7, %p319_p6 }
  0x12   :  { %p322_p9 = pnand %p321_p8, %p315_p5 }
  0x14   :  { %325 = shalt.err (!%p322_p9)
}
  0x15   :  { %41 = dma.hbm_to_vmem [thread:$0]  %s424_s5, 16, %s39_s27, [#allocation5]  }
  0x16   :  { %326 = dma.done.wait [#allocation3], 128  }
  0x17   :  { %327 = vsyncadd [#allocation3], 4294967168 }
  0x18   :  { %328 = dma.done.wait [#allocation5], 16  }
  0x19   :  { %329 = vsyncadd [#allocation5], 4294967280  ;;  %v332_v0 = vmov 0.0   ;;  %vm333_vm0 = vmmov 0   ;;  %v54_v1 = vld [vmem:[%s421_s2 + $0x18] sm:$0xff]  ;;  %v53_v2 = vld [vmem:[%s421_s2 + $0x10] sm:$0xff] }
  0x1a   :  { %260 = vmatprep.subr.mxu0 %v332_v0  ;;  %268 = vmatprep.mubr.msk.f32.mxu0 %vm333_vm0, %v332_v0  ;;  %v140_v3 = vld [vmem:[%s423_s4 + $0x18] sm:$0xff]  ;;  %v52_v4 = vld [vmem:[%s421_s2 + $0x8] sm:$0xff]  ;;  %v51_v5 = vld [vmem:[%s421_s2] sm:$0xff]  ;;  %vm62_vm1 = vcmask 261120   ;;  %vm237_vm2 = vcmask 7168  }
  0x1b   :  { %271 = vmatprep.subr.mxu1 %v332_v0  ;;  %279 = vmatprep.mubr.msk.f32.mxu1 %vm333_vm0, %v332_v0  ;;  %v50_v6 = vld [vmem:[#allocation2] sm:$0xff]  ;;  %v139_v7 = vld [vmem:[%s423_s4 + $0x10] sm:$0xff]  ;;  %v138_v8 = vld [vmem:[%s423_s4 + $0x8] sm:$0xff] }
  0x1c   :  { %261 = vmatpush3.msra.mxu0 %v54_v1  ;;  %272 = vmatpush3.msra.mxu1 %v140_v3  ;;  %v137_v9 = vld [vmem:[%s423_s4] sm:$0xff]  ;;  %v247_v15 = vld [vmem:[#allocation4] ss:$0 sm:$0xff] }
  0x1d   :  { %262 = vmatprep.subr.mxu0 %v332_v0  ;;  %273 = vmatprep.subr.mxu1 %v332_v0  ;;  %v245_v10 = vld [vmem:[%s422_s3] ss:$0 sm:$0xff] }
  0x1e   :  { %263 = vmatpush3.msra.mxu0 %v53_v2  ;;  %274 = vmatpush3.msra.mxu1 %v139_v7  ;;  %v249_v19 = vld [vmem:[%s425_s6] ss:$0 sm:$0xff] }
  0x1f   :  { %264 = vmatprep.subr.mxu0 %v332_v0  ;;  %275 = vmatprep.subr.mxu1 %v332_v0  ;;  %v233_v23 = vld [vmem:[%s420_s1] sm:$0xff] }
  0x20   :  { %265 = vmatpush3.msra.mxu0 %v52_v4  ;;  %276 = vmatpush3.msra.mxu1 %v138_v8 }
  0x21   :  { %266 = vmatprep.subr.mxu0 %v332_v0  ;;  %277 = vmatprep.subr.mxu1 %v332_v0 }
  0x22   :  { %267 = vmatpush3.msra.mxu0 %v51_v5  ;;  %278 = vmatpush3.msra.mxu1 %v137_v9 }
  0x23   :  { %269 = vmatmul.mubr.msk.f32.vlgmr.msra.gmra.mxu0 %vm62_vm1, %v50_v6 }
  0xe3   :  { %v132_v11 = vpop.f32.mrf.mxu0 }
  0xe4   :  { %v133_v12 = vadd.f32 %v245_v10, %v132_v11 }
  0xe5   :  { %v270_v13 = vpop.f32.mrf.mxu0 }
  0xe6   :  { %v136_v14 = vmax.f32 %v133_v12, 0.0 }
  0xe8   :  { %280 = vmatmul.mubr.msk.f32.vlgmr.msra.gmra.mxu1 %vm62_vm1, %v136_v14 }
 0x1a8   :  { %v217_v16 = vpop.f32.mrf.mxu1 }
 0x1a9   :  { %v218_v17 = vadd.f32 %v247_v15, %v217_v16 }
 0x1aa   :  { %v281_v18 = vpop.f32.mrf.mxu1 }
 0x1ab   :  { %v221_v20 = vmax.f32 %v218_v17, 0.0 }
 0x1ad   :  { %v229_v21 = vmul.f32 %v249_v19, %v221_v20 }
 0x1af   :  { %v230_v22 = vsel %vm62_vm1, %v229_v21, 0.0 }
 0x1b0   :  { %231 = vadd.xlane.f32.xlu0 %v230_v22 }
 0x239   :  { %v232_v24 = vpop.xlane.xlu0 %231 }
 0x23a   :  { %v234_v25 = vadd.f32 %v233_v23, %v232_v24 }
 0x23c   :  { %vm235_vm3 = vcmp.gt.f32.partialorder %v234_v25, 0.0 }
 0x23d   :  { %v236_v26 = vsel %vm235_vm3, -1.0, %v332_v0 }
 0x23e   :  { %238 = vst.msk [vmem:[%s426_s7] sm:$0xff] %vm237_vm2, %v236_v26 }
 0x23f   :  { %243 = vsyncpa [#allocation3], 1 }
 0x240   :  { %244 = vsyncpa [#allocation5], 1 }

</bundles_post_ra>
